<compile_context>
chip_gen: v7x
topology: tpu7x:2x2x1
jax: 0.10.0
libtpu: 0.0.40
codegen_flags: <defaults>
</compile_context>

<pallas_src>
import functools

import jax
import jax.numpy as jnp
from jax.experimental import pallas as pl
from jax.experimental.pallas import tpu as pltpu

BN_EPS = 1e-5
LRELU_SLOPE = 0.2
_LANE = 128
_SUBLANE = 8


def _round_up(x, m):
    return (x + m - 1) // m * m


@functools.lru_cache(maxsize=None)
def _vmem_limit_bytes():
    """Generation-aware scoped VMEM limit (v7x 64MiB is the binding constraint)."""
    try:
        cap = int(pltpu.get_tpu_info().vmem_capacity_bytes)
    except Exception:
        cap = 64 * 1024 * 1024  # conservative fallback (v7x per-core VMEM)
    return min(int(cap * 0.8), 100 * 1024 * 1024)


def _pick_tile_m(k_pad, elem_bytes, vmem_limit):
    """Largest M tile keeping double-buffered tiles within the VMEM budget."""
    budget = int(vmem_limit * 0.6)
    tm = 2048
    while tm > 128:
        need = (2 * tm * k_pad * elem_bytes        # double-buffered patch tile
                + 2 * k_pad * _LANE * elem_bytes   # weight tile (double-buffered)
                + 2 * tm * _LANE * 4               # f32 y output tile
                + 2 * _SUBLANE * _LANE * 4)        # stats accumulator block
        if need <= budget:
            break
        tm //= 2
    return tm


# ---------------------------------------------------------------------------
# Pass 1: conv-as-matmul + per-channel sum / sum-of-squares accumulation.
# grid = (cout_tiles [parallel], m_tiles [arbitrary])
# ---------------------------------------------------------------------------
def _matmul_stats_kernel(p_ref, w_ref, y_ref, s_ref):
    @pl.when(pl.program_id(1) == 0)
    def _init():
        s_ref[...] = jnp.zeros_like(s_ref)

    # MXU: (TM, K_pad) x (K_pad, 128) -> (TM, 128), f32 accumulation.
    y = jnp.dot(p_ref[...], w_ref[...], preferred_element_type=jnp.float32)
    y_ref[...] = y

    tn = y.shape[1]
    upd = jnp.concatenate(
        [jnp.sum(y, axis=0, keepdims=True),          # row 0: sum
         jnp.sum(y * y, axis=0, keepdims=True),      # row 1: sum of squares
         jnp.zeros((_SUBLANE - 2, tn), jnp.float32)],
        axis=0)
    s_ref[...] = s_ref[...] + upd                    # resident accumulator block


# ---------------------------------------------------------------------------
# Pass 2: BatchNorm (from accumulated batch stats) + LeakyReLU(0.2).
# grid fully parallel (independent tiles) -> megacore on v7x.
# ---------------------------------------------------------------------------
def _bn_lrelu_kernel(y_ref, s_ref, g_ref, b_ref, o_ref, *, inv_m):
    stats = s_ref[...]
    mean = stats[0:1, :] * inv_m
    var = jnp.maximum(stats[1:2, :] * inv_m - mean * mean, 0.0)
    scale = g_ref[...] * jax.lax.rsqrt(var + BN_EPS)     # EUP rsqrt
    shift = b_ref[...] - mean * scale
    z = y_ref[...] * scale + shift
    o_ref[...] = jnp.where(z >= 0, z, LRELU_SLOPE * z)


def _im2col(x_nhwc, k, stride):
    """Extract conv patches (layout glue; cin is the fastest / lane axis)."""
    n, h, w, c = x_nhwc.shape
    pad = (k - 1) // 2
    xp = jnp.pad(x_nhwc, ((0, 0), (pad, pad), (pad, pad), (0, 0)))
    ho = (h + 2 * pad - k) // stride + 1
    wo = (w + 2 * pad - k) // stride + 1
    cols = []
    for kh in range(k):
        for kw in range(k):
            cols.append(xp[:, kh:kh + stride * ho:stride,
                           kw:kw + stride * wo:stride, :])
    patches = jnp.stack(cols, axis=3)                    # (N, Ho, Wo, K*K, C)
    return patches.reshape(n * ho * wo, k * k * c), (n, ho, wo)


def conv_bn_lrelu(x_nhwc, w_oihw, gamma, beta, stride,
                  compute_dtype=jnp.bfloat16):
    cout, cin, k, _ = w_oihw.shape
    # TODO(synk): on v5e, replace this HBM-materialized im2col (~25x input
    # traffic) with in-kernel patch extraction from a pl.ANY padded-NHWC ref
    # via manual strided DMA; bf16 patches only halve the amplification.
    patches, (n, ho, wo) = _im2col(x_nhwc.astype(compute_dtype), k, stride)
    m = n * ho * wo
    kdim = k * k * cin
    k_pad = _round_up(kdim, _LANE)
    cout_pad = _round_up(cout, _LANE)

    vmem_limit = _vmem_limit_bytes()
    elem = jnp.finfo(compute_dtype).bits // 8
    tm = min(_pick_tile_m(k_pad, elem, vmem_limit), _round_up(m, _SUBLANE))
    m_pad = _round_up(m, tm)
    num_m = m_pad // tm
    num_n = cout_pad // _LANE

    # Zero padding: padded rows/cols contribute exactly 0 to the matmul and to
    # the BN sum / sum-of-squares (we divide by the true M), so stats are exact.
    patches = jnp.pad(patches, ((0, m_pad - m), (0, k_pad - kdim)))
    # PyTorch OIHW -> (kh, kw, cin, cout) -> (K, Cout), matching patch layout.
    wm = jnp.transpose(w_oihw, (2, 3, 1, 0)).reshape(kdim, cout)
    wm = jnp.pad(wm, ((0, k_pad - kdim), (0, cout_pad - cout))).astype(compute_dtype)
    gamma_p = jnp.pad(gamma, (0, cout_pad - cout)).reshape(1, cout_pad)
    beta_p = jnp.pad(beta, (0, cout_pad - cout)).reshape(1, cout_pad)

    y, stats = pl.pallas_call(
        _matmul_stats_kernel,
        grid=(num_n, num_m),
        in_specs=[pl.BlockSpec((tm, k_pad), lambda j, i: (i, 0)),
                  pl.BlockSpec((k_pad, _LANE), lambda j, i: (0, j))],
        out_specs=(pl.BlockSpec((tm, _LANE), lambda j, i: (i, j)),
                   pl.BlockSpec((_SUBLANE, _LANE), lambda j, i: (0, j))),
        out_shape=(jax.ShapeDtypeStruct((m_pad, cout_pad), jnp.float32),
                   jax.ShapeDtypeStruct((_SUBLANE, cout_pad), jnp.float32)),
        compiler_params=pltpu.CompilerParams(
            dimension_semantics=("parallel", "arbitrary"),
            vmem_limit_bytes=vmem_limit),
        cost_estimate=pl.CostEstimate(
            flops=2 * m_pad * k_pad * cout_pad,
            transcendentals=0,
            bytes_accessed=int(patches.nbytes) + int(wm.nbytes)
                           + m_pad * cout_pad * 4),
    )(patches, wm)

    out = pl.pallas_call(
        functools.partial(_bn_lrelu_kernel, inv_m=1.0 / m),
        grid=(num_n, num_m),
        in_specs=[pl.BlockSpec((tm, _LANE), lambda j, i: (i, j)),
                  pl.BlockSpec((_SUBLANE, _LANE), lambda j, i: (0, j)),
                  pl.BlockSpec((1, _LANE), lambda j, i: (0, j)),
                  pl.BlockSpec((1, _LANE), lambda j, i: (0, j))],
        out_specs=pl.BlockSpec((tm, _LANE), lambda j, i: (i, j)),
        out_shape=jax.ShapeDtypeStruct((m_pad, cout_pad), jnp.float32),
        compiler_params=pltpu.CompilerParams(
            dimension_semantics=("parallel", "parallel"),
            vmem_limit_bytes=vmem_limit),
        cost_estimate=pl.CostEstimate(
            flops=6 * m_pad * cout_pad,
            transcendentals=cout_pad,
            bytes_accessed=2 * m_pad * cout_pad * 4),
    )(y, stats, gamma_p, beta_p)

    return out[:m, :cout].reshape(n, ho, wo, cout)


def init_params(key, in_channels, out_channels):
    """Deterministic parameter init (shapes from EncoderCNN.__init__)."""
    channels = [32, 64, 128, 256]
    specs = [(c, 2) for c in channels] + [(out_channels, 1)]
    layers = []
    cin = in_channels
    for cout, stride in specs:
        key, kw, kb = jax.random.split(key, 3)
        fan_in = cin * 5 * 5
        bound = float(1.0 / (fan_in ** 0.5))
        w = jax.random.uniform(kw, (cout, cin, 5, 5), jnp.float32, -bound, bound)
        b = jax.random.uniform(kb, (cout,), jnp.float32, -bound, bound)
        gamma = jnp.ones((cout,), jnp.float32)      # BatchNorm2d default affine
        beta = jnp.zeros((cout,), jnp.float32)
        layers.append(dict(w=w, b=b, gamma=gamma, beta=beta, stride=stride))
        cin = cout
    return layers


def encoder_cnn(x_nchw, params, compute_dtype=jnp.bfloat16):
    # NCHW (PyTorch) -> NHWC (kernels) -> NCHW (PyTorch)
    x = jnp.transpose(x_nchw, (0, 2, 3, 1))
    for p in params:
        # Conv bias intentionally NOT passed: training-mode BatchNorm subtracts
        # the per-channel mean immediately after, so the bias cancels exactly.
        x = conv_bn_lrelu(x, p["w"], p["gamma"], p["beta"], p["stride"],
                          compute_dtype=compute_dtype)
    return jnp.transpose(x, (0, 3, 1, 2))
    # TODO(synk): fuse the last two tiny-M layers (spatial 2x2->1x1) into a
    # single pallas_call with in-kernel weight prefetch to kill per-call overhead.


def encoder_cnn_ref(x_nchw, params, conv_dtype=jnp.float32):
    """Pure-JAX reference (mirrors PyTorch forward, training-mode BN).

    `conv_dtype` lets us build a precision-matched reference for the bf16
    MXU-operand path (accumulation stays f32, BN/LeakyReLU stay f32).
    The reference keeps the conv bias, verifying that dropping it in the
    kernel is numerically exact under training-mode BN.
    """
    x = x_nchw
    for p in params:
        y = jax.lax.conv_general_dilated(
            x.astype(conv_dtype), p["w"].astype(conv_dtype),
            window_strides=(p["stride"], p["stride"]),
            padding=((2, 2), (2, 2)),
            dimension_numbers=("NCHW", "OIHW", "NCHW"),
            preferred_element_type=jnp.float32)
        y = y + p["b"][None, :, None, None]
        mean = jnp.mean(y, axis=(0, 2, 3), keepdims=True)
        var = jnp.mean((y - mean) ** 2, axis=(0, 2, 3), keepdims=True)
        yn = (y - mean) * jax.lax.rsqrt(var + BN_EPS)
        yn = yn * p["gamma"][None, :, None, None] + p["beta"][None, :, None, None]
        x = jnp.where(yn >= 0, yn, LRELU_SLOPE * yn)
    return x


if __name__ == "__main__":
    key = jax.random.PRNGKey(0)
    kx, kp = jax.random.split(key)
    # small shapes: batch=2, in_channels=4, spatial=16x16, out_channels=8
    x = jax.random.normal(kx, (2, 4, 16, 16), jnp.float32)
    params = init_params(kp, in_channels=4, out_channels=8)

    # 1) f32-operand path vs f32 reference (exact module semantics).
    out_f32 = jax.block_until_ready(encoder_cnn(x, params, compute_dtype=jnp.float32))
    ref_f32 = encoder_cnn_ref(x, params, conv_dtype=jnp.float32)
    assert out_f32.shape == (2, 8, 1, 1), out_f32.shape   # 16 -> 8 -> 4 -> 2 -> 1 -> 1
    err32 = float(jnp.max(jnp.abs(out_f32 - ref_f32)))
    assert jnp.allclose(out_f32, ref_f32, rtol=1e-2, atol=1e-2), f"f32 max abs err {err32}"

    # 2) bf16-operand MXU path (production config for v6e/v7x peak) vs a
    #    precision-matched reference (same bf16 conv operands, f32 accumulate).
    out_bf16 = jax.block_until_ready(encoder_cnn(x, params, compute_dtype=jnp.bfloat16))
    ref_bf16 = encoder_cnn_ref(x, params, conv_dtype=jnp.bfloat16)
    assert out_bf16.shape == (2, 8, 1, 1), out_bf16.shape
    err16 = float(jnp.max(jnp.abs(out_bf16 - ref_bf16)))
    assert jnp.allclose(out_bf16, ref_bf16, rtol=1e-2, atol=1e-2), f"bf16 max abs err {err16}"

    print("KERNEL_OK")
</pallas_src>

<mosaic_0001>
module attributes {stable_mosaic.version = 11 : i64} {
  func.func @_matmul_stats_kernel(%arg0: i32, %arg1: i32, %arg2: memref<128x128xf32, #tpu.memory_space<vmem>>, %arg3: memref<128x128xf32, #tpu.memory_space<vmem>>, %arg4: memref<128x128xf32, #tpu.memory_space<vmem>>, %arg5: memref<8x128xf32, #tpu.memory_space<vmem>>) attributes {dimension_semantics = [#tpu.dimension_semantics<parallel>, #tpu.dimension_semantics<arbitrary>], iteration_bounds = array<i64: 1, 1>, scalar_prefetch = 0 : i64, scratch_operands = 0 : i64, tpu.core_type = #tpu.core_type<tc>, window_params = [{transform_indices = @transform_0, window_bounds = array<i64: 128, 128>}, {transform_indices = @transform_1, window_bounds = array<i64: 128, 128>}, {transform_indices = @transform_2, window_bounds = array<i64: 128, 128>}, {transform_indices = @transform_3, window_bounds = array<i64: 8, 128>}]} {
    %c0_i32 = arith.constant 0 : i32
    %0 = arith.cmpi eq, %arg1, %c0_i32 : i32
    %1 = arith.extui %0 : i1 to i32
    %c0_i32_0 = arith.constant 0 : i32
    %2 = arith.cmpi ne, %1, %c0_i32_0 : i32
    scf.if %2 {
      %cst_13 = arith.constant 0.000000e+00 : f32
      %17 = vector.broadcast %cst_13 : f32 to vector<8x128xf32>
      %c0_14 = arith.constant 0 : index
      %c0_15 = arith.constant 0 : index
      %18 = vector.load %arg5[%c0_14, %c0_15] : memref<8x128xf32, #tpu.memory_space<vmem>>, vector<8x128xf32>
      tpu.vector_store %arg5[%c0_14, %c0_15], %17 {strides = array<i32>} : memref<8x128xf32, #tpu.memory_space<vmem>>, vector<8x128xf32>,
    } else {
    }
    %c0 = arith.constant 0 : index
    %c0_1 = arith.constant 0 : index
    %3 = vector.load %arg2[%c0, %c0_1] : memref<128x128xf32, #tpu.memory_space<vmem>>, vector<128x128xf32>
    %c0_2 = arith.constant 0 : index
    %c0_3 = arith.constant 0 : index
    %4 = vector.load %arg3[%c0_2, %c0_3] : memref<128x128xf32, #tpu.memory_space<vmem>>, vector<128x128xf32>
    %cst = arith.constant dense<0.000000e+00> : vector<128x128xf32>
    %5 = tpu.matmul %3, %4, %cst {dimension_numbers = #tpu.dot_dimension_numbers<[1], [0], [0], [1], [0, 0, 1, 1], [], []>} : vector<128x128xf32>, vector<128x128xf32>, vector<128x128xf32> -> vector<128x128xf32>
    %c0_4 = arith.constant 0 : index
    %c0_5 = arith.constant 0 : index
    %6 = vector.load %arg4[%c0_4, %c0_5] : memref<128x128xf32, #tpu.memory_space<vmem>>, vector<128x128xf32>
    tpu.vector_store %arg4[%c0_4, %c0_5], %5 {strides = array<i32>} : memref<128x128xf32, #tpu.memory_space<vmem>>, vector<128x128xf32>,
    %cst_6 = arith.constant dense<0.000000e+00> : vector<128xf32>
    %7 = vector.multi_reduction <add>, %5, %cst_6 [0] : vector<128x128xf32> to vector<128xf32>
    %8 = vector.shape_cast %7 : vector<128xf32> to vector<1x128xf32>
    %9 = arith.mulf %5, %5 : vector<128x128xf32>
    %cst_7 = arith.constant dense<0.000000e+00> : vector<128xf32>
    %10 = vector.multi_reduction <add>, %9, %cst_7 [0] : vector<128x128xf32> to vector<128xf32>
    %11 = vector.shape_cast %10 : vector<128xf32> to vector<1x128xf32>
    %cst_8 = arith.constant 0.000000e+00 : f32
    %12 = vector.broadcast %cst_8 : f32 to vector<6x128xf32>
    %13 = tpu.concatenate %8, %11, %12 in 0 : vector<1x128xf32>, vector<1x128xf32>, vector<6x128xf32> -> vector<8x128xf32>
    %c0_9 = arith.constant 0 : index
    %c0_10 = arith.constant 0 : index
    %14 = vector.load %arg5[%c0_9, %c0_10] : memref<8x128xf32, #tpu.memory_space<vmem>>, vector<8x128xf32>
    %15 = arith.addf %14, %13 : vector<8x128xf32>
    %c0_11 = arith.constant 0 : index
    %c0_12 = arith.constant 0 : index
    %16 = vector.load %arg5[%c0_11, %c0_12] : memref<8x128xf32, #tpu.memory_space<vmem>>, vector<8x128xf32>
    tpu.vector_store %arg5[%c0_11, %c0_12], %15 {strides = array<i32>} : memref<8x128xf32, #tpu.memory_space<vmem>>, vector<8x128xf32>,
    return
  }
  func.func @transform_0(%arg0: i32, %arg1: i32) -> (i32, i32) {
    %c0_i32 = arith.constant 0 : i32
    %c0_i32_0 = arith.constant 0 : i32
    return %arg1, %c0_i32 : i32, i32
  }
  func.func @transform_1(%arg0: i32, %arg1: i32) -> (i32, i32) {
    %c0_i32 = arith.constant 0 : i32
    %c0_i32_0 = arith.constant 0 : i32
    return %c0_i32, %arg0 : i32, i32
  }
  func.func @transform_2(%arg0: i32, %arg1: i32) -> (i32, i32) {
    %c0_i32 = arith.constant 0 : i32
    return %arg1, %arg0 : i32, i32
  }
  func.func @transform_3(%arg0: i32, %arg1: i32) -> (i32, i32) {
    %c0_i32 = arith.constant 0 : i32
    %c0_i32_0 = arith.constant 0 : i32
    return %c0_i32, %arg0 : i32, i32
  }
}

</mosaic_0001>

<bundles_post_ra>
// kernel: tpu_custom_call.1
= control target key start
LH: loop header
LB: loop body
LE: loop exit
PB: predicated region body
PF: predicated region fallthrough
CT: control target
= control target key end

     0   :  { %9 = vsyncpa [#allocation3], 0  ;;  %s678_s0 = inlined_call_operand.hbm [shape: f32[128,128], index: 0, kind: input, shape index: {}]   ;;  %s679_s1 = inlined_call_operand.hbm [shape: f32[128,128], index: 1, kind: input, shape index: {}]   ;;  %s680_s2 = inlined_call_operand.hbm [shape: f32[128,128], index: 2, kind: output, shape index: {0}]   ;;  %s681_s3 = inlined_call_operand.hbm [shape: f32[8,128], index: 3, kind: output, shape index: {1}]  }
   0x1   :  { %10 = vsyncpa [#allocation6], 0 }
   0x2   :  { %11 = vsyncpa [#allocation4], 0 }
   0x3   :  { %12 = vsyncpa [#allocation9], 0  ;;  %s577_s12 = smov [#allocation2]   ;;  %s481_s16 = scalar_lea.hbm %s678_s0, 2048 }
   0x4   :  { %s18_s13 = sshll.u32 %s577_s12, 4  ;;  %p482_p0 = scmp.ne.s32.totalorder %s678_s0, %s481_s16  ;;  %s19_s13 = int_to_ptr.vmem [resolvable:$true] %s18_s13 }
   0x5   :  { %p485_p1 = scmp.lt.u32.totalorder %s481_s16, %s678_s0 }
   0x7   :  { %p487_p2 = pnand %p485_p1, %p482_p0 }
   0x9   :  { %490 = shalt.err (!%p487_p2)
}
   0xa   :  { %s491_s21 = scalar_lea.vmem %s19_s13, 2048  ;;  %p496_p4 = scmp.lt.s32.totalorder %s19_s13, %s19_s13 }
   0xb   :  { %p492_p3 = scmp.ne.s32.totalorder %s19_s13, %s491_s21  ;;  %p497_p5 = scmp.lt.s32.totalorder %s491_s21, %s491_s21 }
   0xd   :  { %p498_p6 = por %p497_p5, %p496_p4 }
   0xf   :  { %p499_p7 = pnand %p498_p6, %p492_p3 }
  0x11   :  { %502 = shalt.err (!%p499_p7)
}
  0x12   :  { %s578_s22 = smov 128   ;;  %s579_s23 = smov 8  }
  0x13   :  { %24 = dma.hbm_to_vmem [thread:$0]  %s678_s0, 2048, %s19_s13, [#allocation3], %s578_s22, %s578_s22, %s579_s23  }
  0x14   :  { %s580_s26 = smov [#allocation5]   ;;  %s503_s30 = scalar_lea.hbm %s679_s1, 2048 }
  0x15   :  { %s30_s27 = sshll.u32 %s580_s26, 4  ;;  %p504_p8 = scmp.ne.s32.totalorder %s679_s1, %s503_s30  ;;  %s31_s27 = int_to_ptr.vmem [resolvable:$true] %s30_s27 }
  0x16   :  { %p507_p9 = scmp.lt.u32.totalorder %s503_s30, %s679_s1 }
  0x18   :  { %p509_p10 = pnand %p507_p9, %p504_p8 }
  0x1a   :  { %512 = shalt.err (!%p509_p10)
}
  0x1b   :  { %s513_s8 = scalar_lea.vmem %s31_s27, 2048  ;;  %p518_p12 = scmp.lt.s32.totalorder %s31_s27, %s31_s27 }
  0x1c   :  { %p514_p11 = scmp.ne.s32.totalorder %s31_s27, %s513_s8  ;;  %p519_p13 = scmp.lt.s32.totalorder %s513_s8, %s513_s8 }
  0x1e   :  { %p520_p0 = por %p519_p13, %p518_p12 }
  0x20   :  { %p521_p1 = pnand %p520_p0, %p514_p11 }
  0x22   :  { %524 = shalt.err (!%p521_p1)
}
  0x23   :  { %36 = dma.hbm_to_vmem [thread:$0]  %s679_s1, 2048, %s31_s27, [#allocation6], %s578_s22, %s578_s22, %s579_s23  }
  0x24   :  { %569 = dma.done.wait [#allocation3], 2048  }
  0x25   :  { %570 = vsyncadd [#allocation3], 4294965248 }
  0x26   :  { %571 = dma.done.wait [#allocation6], 2048  }
  0x27   :  { %572 = vsyncadd [#allocation6], 4294965248  ;;  %v64_v0 = vld [vmem:[#allocation5] sm:$0xff]  ;;  %v65_v1 = vld [vmem:[#allocation5 + $0x8] sm:$0xff]  ;;  %s581_s1 = smov [#allocation7]  }
  0x28   :  { %v66_v2 = vld [vmem:[#allocation5 + $0x10] sm:$0xff]  ;;  %v426_v3 = vpack.c.bf16 %v65_v1, %v64_v0  ;;  %v67_v4 = vld [vmem:[#allocation5 + $0x18] sm:$0xff]  ;;  %v68_v6 = vld [vmem:[#allocation5 + $0x20] sm:$0xff]  ;;  %s311_s10 = sshll.u32 %s581_s1, 4  ;;  %s312_s10 = int_to_ptr.vmem [resolvable:$true] %s311_s10 }
  0x29   :  { %v430_v5 = vpack.c.bf16 %v67_v4, %v66_v2  ;;  %v69_v7 = vld [vmem:[#allocation5 + $0x28] sm:$0xff]  ;;  %v48_v9 = vld [vmem:[#allocation2] sm:$0xff]  ;;  %v70_v10 = vld [vmem:[#allocation5 + $0x30] sm:$0xff]  ;;  %s525_s11 = scalar_lea.vmem %s312_s10, 2048  ;;  %p530_p3 = scmp.lt.s32.totalorder %s312_s10, %s312_s10 }
  0x2a   :  { %427 = vmatprep.subr.bf16.mxu0 %v426_v3  ;;  %458 = vmatprep.subr.bf16.mxu1 %v426_v3  ;;  %v434_v8 = vpack.c.bf16 %v69_v7, %v68_v6  ;;  %v71_v11 = vld [vmem:[#allocation5 + $0x38] sm:$0xff]  ;;  %v56_v12 = vld [vmem:[#allocation2 + $0x40] sm:$0xff]  ;;  %v73_v15 = vld [vmem:[#allocation5 + $0x48] sm:$0xff]  ;;  %p526_p2 = scmp.ne.s32.totalorder %s312_s10, %s525_s11  ;;  %p531_p4 = scmp.lt.s32.totalorder %s525_s11, %s525_s11 }
  0x2b   :  { %429 = vmatpush3.bf16.msra.mxu0 %v426_v3  ;;  %466 = vmatpush3.bf16.msra.mxu1 %v426_v3  ;;  %v438_v13 = vpack.c.bf16 %v71_v11, %v70_v10  ;;  %v72_v14 = vld [vmem:[#allocation5 + $0x40] sm:$0xff]  ;;  %v74_v17 = vld [vmem:[#allocation5 + $0x50] sm:$0xff]  ;;  %v75_v18 = vld [vmem:[#allocation5 + $0x58] sm:$0xff] }
  0x2c   :  { %431 = vmatprep.subr.bf16.mxu0 %v430_v5  ;;  %459 = vmatprep.subr.bf16.mxu1 %v430_v5  ;;  %v442_v16 = vpack.c.bf16 %v73_v15, %v72_v14  ;;  %v446_v19 = vpack.c.bf16 %v75_v18, %v74_v17  ;;  %v76_v20 = vld [vmem:[#allocation5 + $0x60] sm:$0xff]  ;;  %v77_v21 = vld [vmem:[#allocation5 + $0x68] sm:$0xff]  ;;  %v78_v23 = vld [vmem:[#allocation5 + $0x70] sm:$0xff]  ;;  %p532_p5 = por %p531_p4, %p530_p3 }
  0x2d   :  { %402 = vmatprep.mubr.f32.mxu0 %v48_v9  ;;  %414 = vmatprep.mubr.f32.mxu1 %v56_v12  ;;  %v450_v22 = vpack.c.bf16 %v77_v21, %v76_v20  ;;  %v79_v24 = vld [vmem:[#allocation5 + $0x78] sm:$0xff]  ;;  %v49_v26 = vld [vmem:[#allocation2 + $0x8] sm:$0xff]  ;;  %v50_v28 = vld [vmem:[#allocation2 + $0x10] sm:$0xff] }
  0x2e   :  { %v454_v25 = vpack.c.bf16 %v79_v24, %v78_v23  ;;  %v57_v27 = vld [vmem:[#allocation2 + $0x48] sm:$0xff]  ;;  %v58_v29 = vld [vmem:[#allocation2 + $0x50] sm:$0xff]  ;;  %v51_v30 = vld [vmem:[#allocation2 + $0x18] sm:$0xff]  ;;  %p533_p6 = pnand %p532_p5, %p526_p2 }
  0x2f   :  { %433 = vmatpush3.bf16.msra.mxu0 %v430_v5  ;;  %467 = vmatpush3.bf16.msra.mxu1 %v430_v5  ;;  %v59_v31 = vld [vmem:[#allocation2 + $0x58] sm:$0xff]  ;;  %v52_v32 = vld [vmem:[#allocation2 + $0x20] sm:$0xff]  ;;  %v53_v34 = vld [vmem:[#allocation2 + $0x28] sm:$0xff] }
  0x30   :  { %435 = vmatprep.subr.bf16.mxu0 %v434_v8  ;;  %460 = vmatprep.subr.bf16.mxu1 %v434_v8  ;;  %v60_v33 = vld [vmem:[#allocation2 + $0x60] sm:$0xff]  ;;  %v61_v35 = vld [vmem:[#allocation2 + $0x68] sm:$0xff]  ;;  %v54_v36 = vld [vmem:[#allocation2 + $0x30] sm:$0xff] }
  0x31   :  { %v62_v37 = vld [vmem:[#allocation2 + $0x70] sm:$0xff]  ;;  %v55_v38 = vld [vmem:[#allocation2 + $0x38] sm:$0xff] }
  0x32   :  { %v63_v39 = vld [vmem:[#allocation2 + $0x78] sm:$0xff] }
  0x33   :  { %437 = vmatpush3.bf16.msra.mxu0 %v434_v8  ;;  %468 = vmatpush3.bf16.msra.mxu1 %v434_v8 }
  0x34   :  { %439 = vmatprep.subr.bf16.mxu0 %v438_v13  ;;  %461 = vmatprep.subr.bf16.mxu1 %v438_v13 }
  0x37   :  { %441 = vmatpush3.bf16.msra.mxu0 %v438_v13  ;;  %469 = vmatpush3.bf16.msra.mxu1 %v438_v13 }
  0x38   :  { %443 = vmatprep.subr.bf16.mxu0 %v442_v16  ;;  %462 = vmatprep.subr.bf16.mxu1 %v442_v16 }
  0x3b   :  { %445 = vmatpush3.bf16.msra.mxu0 %v442_v16  ;;  %470 = vmatpush3.bf16.msra.mxu1 %v442_v16 }
  0x3c   :  { %447 = vmatprep.subr.bf16.mxu0 %v446_v19  ;;  %463 = vmatprep.subr.bf16.mxu1 %v446_v19 }
  0x3f   :  { %449 = vmatpush3.bf16.msra.mxu0 %v446_v19  ;;  %471 = vmatpush3.bf16.msra.mxu1 %v446_v19 }
  0x40   :  { %451 = vmatprep.subr.bf16.mxu0 %v450_v22  ;;  %464 = vmatprep.subr.bf16.mxu1 %v450_v22 }
  0x43   :  { %453 = vmatpush3.bf16.msra.mxu0 %v450_v22  ;;  %472 = vmatpush3.bf16.msra.mxu1 %v450_v22 }
  0x44   :  { %455 = vmatprep.subr.bf16.mxu0 %v454_v25  ;;  %465 = vmatprep.subr.bf16.mxu1 %v454_v25 }
  0x47   :  { %457 = vmatpush3.bf16.msra.mxu0 %v454_v25  ;;  %473 = vmatpush3.bf16.msra.mxu1 %v454_v25 }
  0x4a   :  { %403 = vmatmul.mubr.f32.vlgmr.msra.gmra.mrb[0].mxu0 %v49_v26  ;;  %415 = vmatmul.mubr.f32.vlgmr.msra.gmra.mrb[0].mxu1 %v57_v27 }
  0x4b   :  { %405 = vmatprep.mubr.f32.mxu0 %v50_v28  ;;  %417 = vmatprep.mubr.f32.mxu1 %v58_v29 }
  0x4e   :  { %406 = vmatmul.mubr.f32.gmra.mrb[2].mxu0 %v51_v30  ;;  %418 = vmatmul.mubr.f32.gmra.mrb[2].mxu1 %v59_v31 }
  0x4f   :  { %408 = vmatprep.mubr.f32.mxu0 %v52_v32  ;;  %420 = vmatprep.mubr.f32.mxu1 %v60_v33 }
  0x52   :  { %409 = vmatmul.mubr.f32.gmra.mrb[4].mxu0 %v53_v34  ;;  %421 = vmatmul.mubr.f32.gmra.mrb[4].mxu1 %v61_v35 }
  0x53   :  { %411 = vmatprep.mubr.f32.mxu0 %v54_v36  ;;  %423 = vmatprep.mubr.f32.mxu1 %v62_v37 }
  0x56   :  { %412 = vmatmul.mubr.f32.gmra.mrb[6].mxu0 %v55_v38  ;;  %424 = vmatmul.mubr.f32.gmra.mrb[6].mxu1 %v63_v39 }
 0x11d   :  { %v404_v40 = vpop.f32.mrb[0].mxu0  ;;  %v633_v41 = vpop.f32.mrb[0].mxu1 }
 0x11e   :  { %226 = vst [vmem:[#allocation7 + $0x8] sm:$0xff] %v404_v40  ;;  %v263_v42 = vmul.f32 %v404_v40, %v404_v40  ;;  %v146_v43 = vpop.f32.mrb[1].mxu0  ;;  %234 = vst [vmem:[#allocation7 + $0x48] sm:$0xff] %v633_v41  ;;  %v636_v44 = vpop.f32.mrb[1].mxu1 }
 0x11f   :  { %225 = vst [vmem:[#allocation7] sm:$0xff] %v146_v43  ;;  %v241_v45 = vadd.f32 %v404_v40, %v146_v43  ;;  %v262_v46 = vmul.f32 %v146_v43, %v146_v43  ;;  %233 = vst [vmem:[#allocation7 + $0x40] sm:$0xff] %v636_v44 }
 0x121   :  { %v278_v47 = vadd.f32 %v263_v42, %v262_v46  ;;  %v407_v48 = vpop.f32.mrb[2].mxu0  ;;  %v639_v49 = vpop.f32.mrb[2].mxu1 }
 0x122   :  { %228 = vst [vmem:[#allocation7 + $0x18] sm:$0xff] %v407_v48  ;;  %v156_v50 = vpop.f32.mrb[3].mxu0  ;;  %236 = vst [vmem:[#allocation7 + $0x58] sm:$0xff] %v639_v49  ;;  %v196_v51 = vpop.f32.mrb[3].mxu1  ;;  %v265_v54 = vmul.f32 %v407_v48, %v407_v48 }
 0x123   :  { %227 = vst [vmem:[#allocation7 + $0x10] sm:$0xff] %v156_v50  ;;  %v242_v52 = vadd.f32 %v241_v45, %v156_v50  ;;  %v264_v53 = vmul.f32 %v156_v50, %v156_v50  ;;  %235 = vst [vmem:[#allocation7 + $0x50] sm:$0xff] %v196_v51 }
 0x125   :  { %v279_v55 = vadd.f32 %v278_v47, %v264_v53  ;;  %v410_v56 = vpop.f32.mrb[4].mxu0  ;;  %v243_v57 = vadd.f32 %v407_v48, %v242_v52  ;;  %v422_v58 = vpop.f32.mrb[4].mxu1 }
 0x126   :  { %230 = vst [vmem:[#allocation7 + $0x28] sm:$0xff] %v410_v56  ;;  %v166_v59 = vpop.f32.mrb[5].mxu0  ;;  %238 = vst [vmem:[#allocation7 + $0x68] sm:$0xff] %v422_v58  ;;  %v206_v60 = vpop.f32.mrb[5].mxu1  ;;  %v267_v0 = vmul.f32 %v410_v56, %v410_v56 }
 0x127   :  { %229 = vst [vmem:[#allocation7 + $0x20] sm:$0xff] %v166_v59  ;;  %v244_v61 = vadd.f32 %v243_v57, %v166_v59  ;;  %v266_v62 = vmul.f32 %v166_v59, %v166_v59  ;;  %v280_v63 = vadd.f32 %v279_v55, %v265_v54  ;;  %237 = vst [vmem:[#allocation7 + $0x60] sm:$0xff] %v206_v60 }
 0x129   :  { %v281_v1 = vadd.f32 %v280_v63, %v266_v62  ;;  %v413_v2 = vpop.f32.mrb[6].mxu0  ;;  %v245_v3 = vadd.f32 %v410_v56, %v244_v61  ;;  %v425_v4 = vpop.f32.mrb[6].mxu1 }
 0x12a   :  { %232 = vst [vmem:[#allocation7 + $0x38] sm:$0xff] %v413_v2  ;;  %v176_v5 = vpop.f32.mrb[7].mxu0  ;;  %240 = vst [vmem:[#allocation7 + $0x78] sm:$0xff] %v425_v4  ;;  %v216_v6 = vpop.f32.mrb[7].mxu1 }
 0x12b   :  { %231 = vst [vmem:[#allocation7 + $0x30] sm:$0xff] %v176_v5  ;;  %v246_v7 = vadd.f32 %v245_v3, %v176_v5  ;;  %v268_v8 = vmul.f32 %v176_v5, %v176_v5  ;;  %v282_v9 = vadd.f32 %v281_v1, %v267_v0  ;;  %239 = vst [vmem:[#allocation7 + $0x70] sm:$0xff] %v216_v6 }
 0x12c   :  { %536 = shalt.err (!%p533_p6)
}
 0x12d   :  { %s537_s14 = scalar_lea.hbm %s680_s2, 2048 }
 0x12e   :  { %p538_p7 = scmp.ne.s32.totalorder %s680_s2, %s537_s14  ;;  %p541_p8 = scmp.lt.u32.totalorder %s537_s14, %s680_s2 }
 0x130   :  { %p543_p9 = pnand %p541_p8, %p538_p7 }
 0x132   :  { %546 = shalt.err (!%p543_p9)
}
 0x133   :  { %317 = dma.vmem_to_hbm [thread:$0]  %s312_s10, 2048, %s680_s2, [#allocation4], %s578_s22, %s578_s22, %s579_s23   ;;  %v269_v10 = vmul.f32 %v413_v2, %v413_v2  ;;  %v247_v11 = vadd.f32 %v413_v2, %v246_v7  ;;  %v283_v12 = vadd.f32 %v282_v9, %v268_v8  ;;  %v270_v13 = vmul.f32 %v636_v44, %v636_v44 }
 0x134   :  { %v271_v16 = vmul.f32 %v633_v41, %v633_v41  ;;  %v272_v19 = vmul.f32 %v196_v51, %v196_v51  ;;  %v273_v22 = vmul.f32 %v639_v49, %v639_v49  ;;  %v274_v25 = vmul.f32 %v206_v60, %v206_v60  ;;  %s582_s2 = smov [#allocation8]  }
 0x135   :  { %v284_v14 = vadd.f32 %v283_v12, %v269_v10  ;;  %v248_v15 = vadd.f32 %v247_v11, %v636_v44  ;;  %v275_v28 = vmul.f32 %v422_v58, %v422_v58  ;;  %v276_v31 = vmul.f32 %v216_v6, %v216_v6  ;;  %s324_s21 = sshll.u32 %s582_s2, 4  ;;  %s325_s21 = int_to_ptr.vmem [resolvable:$true] %s324_s21 }
 0x136   :  { %v277_v34 = vmul.f32 %v425_v4, %v425_v4  ;;  %vm299_vm0 = vcmask 1040384   ;;  %vm301_vm1 = vcmask 1041408   ;;  %s547_s22 = scalar_lea.vmem %s325_s21, 128  ;;  %p552_p11 = scmp.lt.s32.totalorder %s325_s21, %s325_s21 }
 0x137   :  { %v285_v17 = vadd.f32 %v284_v14, %v270_v13  ;;  %v249_v18 = vadd.f32 %v633_v41, %v248_v15  ;;  %p548_p10 = scmp.ne.s32.totalorder %s325_s21, %s547_s22  ;;  %p553_p12 = scmp.lt.s32.totalorder %s547_s22, %s547_s22 }
 0x139   :  { %v250_v20 = vadd.f32 %v249_v18, %v196_v51  ;;  %v286_v21 = vadd.f32 %v285_v17, %v271_v16  ;;  %p554_p13 = por %p553_p12, %p552_p11 }
 0x13b   :  { %v287_v23 = vadd.f32 %v286_v21, %v272_v19  ;;  %v251_v24 = vadd.f32 %v639_v49, %v250_v20  ;;  %p555_p0 = pnand %p554_p13, %p548_p10 }
 0x13d   :  { %v252_v26 = vadd.f32 %v251_v24, %v206_v60  ;;  %v288_v27 = vadd.f32 %v287_v23, %v273_v22 }
 0x13f   :  { %v289_v29 = vadd.f32 %v288_v27, %v274_v25  ;;  %v253_v30 = vadd.f32 %v422_v58, %v252_v26 }
 0x141   :  { %v254_v32 = vadd.f32 %v253_v30, %v216_v6  ;;  %v290_v33 = vadd.f32 %v289_v29, %v275_v28 }
 0x143   :  { %v255_v35 = vadd.f32 %v425_v4, %v254_v32  ;;  %v291_v36 = vadd.f32 %v290_v33, %v276_v31 }
 0x145   :  { %v256_v37 = vrot.slane %v255_v35, 4  ;;  %v292_v38 = vadd.f32 %v291_v36, %v277_v34 }
 0x147   :  { %v257_v39 = vadd.f32 %v256_v37, %v255_v35  ;;  %v293_v40 = vrot.slane %v292_v38, 4 }
 0x149   :  { %v258_v41 = vrot.slane %v257_v39, 2  ;;  %v294_v42 = vadd.f32 %v293_v40, %v292_v38 }
 0x14b   :  { %v259_v43 = vadd.f32 %v258_v41, %v257_v39  ;;  %v295_v44 = vrot.slane %v294_v42, 2 }
 0x14d   :  { %v260_v45 = vrot.slane %v259_v43, 1  ;;  %v296_v46 = vadd.f32 %v295_v44, %v294_v42 }
 0x14f   :  { %v297_v47 = vrot.slane %v296_v46, 1  ;;  %v261_v48 = vadd.f32 %v260_v45, %v259_v43 }
 0x151   :  { %v298_v49 = vadd.f32 %v297_v47, %v296_v46 }
 0x153   :  { %v300_v50 = vsel %vm299_vm0, %v261_v48, %v298_v49 }
 0x154   :  { %v302_v51 = vsel %vm301_vm1, %v300_v50, 0.0 }
 0x155   :  { %305 = vst [vmem:[#allocation8] sm:$0xff] %v302_v51 }
 0x156   :  { %558 = shalt.err (!%p555_p0)
}
 0x157   :  { %s559_s25 = scalar_lea.hbm %s681_s3, 128 }
 0x158   :  { %p560_p1 = scmp.ne.s32.totalorder %s681_s3, %s559_s25  ;;  %p563_p2 = scmp.lt.u32.totalorder %s559_s25, %s681_s3 }
 0x15a   :  { %p565_p3 = pnand %p563_p2, %p560_p1 }
 0x15c   :  { %568 = shalt.err (!%p565_p3)
}
 0x15d   :  { %327 = dma.vmem_to_hbm [thread:$0]  %s325_s21, 128, %s681_s3, [#allocation9]  }
 0x15e   :  { %573 = dma.done.wait [#allocation4], 2048  }
 0x15f   :  { %574 = vsyncadd [#allocation4], 4294965248 }
 0x160   :  { %575 = dma.done.wait [#allocation9], 128  }
 0x161   :  { %576 = vsyncadd [#allocation9], 4294967168 }
 0x162   :  { %334 = vsyncpa [#allocation3], 1 }
 0x163   :  { %335 = vsyncpa [#allocation6], 1 }
 0x164   :  { %336 = vsyncpa [#allocation4], 1 }
 0x165   :  { %337 = vsyncpa [#allocation9], 1 }

</bundles_post_ra>
